<compile_context>
chip_gen: v5e
topology: v5e:2x2
jax: 0.10.0
libtpu: 0.0.40
codegen_flags: <defaults>
</compile_context>

<pallas_src>
import functools
import math

import jax
import jax.numpy as jnp
from jax.experimental import pallas as pl
from jax.experimental.pallas import tpu as pltpu

_LOG2 = math.log(2.0)
_LANE = 128


def _cdiv(a, b):
    return -(-a // b)


def _ssp_kernel(x_ref, o_ref, *, compute_dtype):
    x = x_ref[...].astype(compute_dtype)
    # Numerically stable softplus: log1p(exp(-|x|)) + max(x, 0)
    # (matches torch.nn.functional.softplus incl. large-x behaviour).
    sp = jnp.log1p(jnp.exp(-jnp.abs(x))) + jnp.maximum(x, 0.0)
    o_ref[...] = (sp - _LOG2).astype(o_ref.dtype)


def _hw_params():
    """Returns (generation tag, target block bytes, vmem_limit_bytes or None)."""
    kind = ""
    try:
        dev = jax.devices()[0]
        if dev.platform == "tpu":
            kind = dev.device_kind.lower()
    except Exception:
        pass
    if "v7" in kind:
        # 3.2 TB/s HBM: ~6 MiB blocks amortize the ~0.35us/step overhead.
        # Double-buffered in+out = 4 x 6 MiB = 24 MiB; raise scoped VMEM for
        # headroom (64 MiB physical on v7x).
        return "v7", 6 * 1024 * 1024, 48 * 1024 * 1024
    if "v6" in kind:
        # 32 MiB scoped-VMEM default comfortably fits 4 x 4 MiB.
        return "v6", 4 * 1024 * 1024, None
    if "v5" in kind:
        # Stay inside v5e's 16 MiB scoped-VMEM default (4 x 2 MiB = 8 MiB).
        return "v5", 2 * 1024 * 1024, None
    return "other", 2 * 1024 * 1024, None


def _pick_lanes(total):
    """Largest lane-dense width that divides `total` exactly (no padding needed)."""
    for lanes in (1024, 512, 256, 128):
        if total % lanes == 0:
            return lanes
    return None


def _choose_block_rows(rows, lanes, itemsize, target_block_bytes):
    sub_mult = max(8, 32 // itemsize)       # sublane packing: 8 f32, 16 bf16, 32 int8/fp8
    if rows <= sub_mult:
        return rows, 1                      # tiny input: single full-extent block
    target_rows = max(sub_mult, target_block_bytes // (lanes * itemsize))
    block_rows = min(rows, target_rows)
    block_rows = max(sub_mult, block_rows - block_rows % sub_mult)
    grid = _cdiv(rows, block_rows)
    # Target >= 4 grid steps: 2 per TensorCore on v7x, and a real
    # double-buffered steady state on single-TC v5e/v6e.
    if grid < 4 and block_rows > sub_mult:
        block_rows = max(sub_mult, _cdiv(_cdiv(rows, 4), sub_mult) * sub_mult)
        grid = _cdiv(rows, block_rows)
    # Prefer an even grid so v7x's two TensorCores stay load-balanced.
    if grid > 1 and grid % 2 == 1:
        alt_rows = max(sub_mult, _cdiv(_cdiv(rows, grid + 1), sub_mult) * sub_mult)
        alt_grid = _cdiv(rows, alt_rows)
        if alt_grid % 2 == 0:
            block_rows, grid = alt_rows, alt_grid
    return block_rows, grid


def _ssp_2d(x2d, compute_dtype, target_block_bytes, vmem_limit, donate_input):
    rows, lanes = x2d.shape
    itemsize = jnp.dtype(x2d.dtype).itemsize
    block_rows, grid = _choose_block_rows(rows, lanes, itemsize, target_block_bytes)

    total = rows * lanes
    cost = pl.CostEstimate(
        flops=5 * total,
        transcendentals=2 * total,
        bytes_accessed=2 * total * itemsize,
    )
    cp_kwargs = dict(dimension_semantics=("parallel",))
    # TODO(synk): if an xprof trace shows only one v7x TensorCore active with
    # "parallel" semantics, switch this axis to pltpu.CORE_PARALLEL.
    if vmem_limit is not None:
        cp_kwargs["vmem_limit_bytes"] = vmem_limit

    return pl.pallas_call(
        functools.partial(_ssp_kernel, compute_dtype=compute_dtype),
        out_shape=jax.ShapeDtypeStruct((rows, lanes), x2d.dtype),
        grid_spec=pltpu.PrefetchScalarGridSpec(
            num_scalar_prefetch=0,
            grid=(grid,),
            in_specs=[pl.BlockSpec((block_rows, lanes), lambda i: (i, 0))],
            out_specs=pl.BlockSpec((block_rows, lanes), lambda i: (i, 0)),
        ),
        compiler_params=pltpu.CompilerParams(**cp_kwargs),
        cost_estimate=cost,
        input_output_aliases=({0: 0} if donate_input else {}),
    )(x2d)


def _ssp_jnp(x):
    # Pure-JAX reference / tiny-tail fallback.
    xf = x.astype(jnp.float32)
    return (jax.nn.softplus(xf) - _LOG2).astype(x.dtype)


def ssp(x, shift=0.5, donate_input=False):
    """SchNet shifted softplus: softplus(x) - log(2).

    `shift` is kept only for API parity with the reference nn.Module, whose
    forward() ignores it and always subtracts log(2) -- we match that exactly.
    Set donate_input=True only when the caller donates x (adds {0:0} aliasing).
    """
    del shift
    orig_shape, orig_dtype = x.shape, x.dtype
    total = math.prod(orig_shape) if orig_shape else 1
    if total == 0:
        return x

    gen, target_block_bytes, vmem_limit = _hw_params()
    # bf16-native math on v6e/v7x (bf16 VPU/EUP keep the kernel HBM-bound);
    # f32 internal math on v5e (no bf16 VPU/EUP) and for all other dtypes.
    if orig_dtype == jnp.bfloat16 and gen in ("v6", "v7"):
        compute_dtype = jnp.bfloat16
    else:
        compute_dtype = jnp.float32

    flat = x.reshape(-1)
    lanes = _pick_lanes(total)
    if lanes is not None:
        # Clean path: contiguous reshape is a free bitcast; zero extra HBM traffic.
        out2d = _ssp_2d(flat.reshape(total // lanes, lanes), compute_dtype,
                        target_block_bytes, vmem_limit, donate_input)
        return out2d.reshape(orig_shape)

    # Ragged total: run the kernel on the lane-aligned bulk, finish the
    # (<128-element) tail with plain jnp, and stitch.  One extra HBM pass
    # (slice + concat) instead of the two full pad/unpad passes.
    # TODO(synk): a manual-DMA (memory_space=pl.ANY) kernel with a short final
    # copy would make even ragged totals fully zero-copy.
    bulk = (total // _LANE) * _LANE
    if bulk == 0:
        return _ssp_jnp(x)  # fewer than 128 elements: not worth a kernel launch
    lanes_b = _pick_lanes(bulk)
    bulk_out = _ssp_2d(flat[:bulk].reshape(bulk // lanes_b, lanes_b), compute_dtype,
                       target_block_bytes, vmem_limit, donate_input=False)
    tail_out = _ssp_jnp(flat[bulk:])
    return jnp.concatenate([bulk_out.reshape(-1), tail_out]).reshape(orig_shape)


if __name__ == "__main__":
    key = jax.random.PRNGKey(0)

    # Canonical small NCHW-like input consistent with conv-activation usage.
    x = jax.random.normal(key, (2, 4, 16, 16), dtype=jnp.float32) * 5.0
    y = jax.block_until_ready(ssp(x))
    y_ref = _ssp_jnp(x)
    assert y.shape == x.shape and y.dtype == x.dtype
    assert jnp.allclose(y, y_ref, atol=1e-5, rtol=1e-5)

    # Ragged flat size -> bulk-kernel + jnp-tail path (no full-array pad/slice).
    x2 = jax.random.normal(jax.random.PRNGKey(1), (3, 5, 7, 19), dtype=jnp.float32) * 3.0
    y2 = jax.block_until_ready(ssp(x2))
    assert y2.shape == x2.shape
    assert jnp.allclose(y2, _ssp_jnp(x2), atol=1e-5, rtol=1e-5)

    # bf16 inputs: bf16-internal math on v6e/v7x, f32-internal on v5e.
    xb = (jax.random.normal(jax.random.PRNGKey(2), (2, 4, 16, 16)) * 5.0).astype(jnp.bfloat16)
    yb = jax.block_until_ready(ssp(xb))
    refb = _ssp_jnp(xb)
    assert yb.dtype == jnp.bfloat16
    assert jnp.allclose(yb.astype(jnp.float32), refb.astype(jnp.float32), atol=2e-2, rtol=2e-2)

    # Larger shape exercising the multi-step (>=4) pipelined grid, under jit.
    x3 = jax.random.normal(jax.random.PRNGKey(3), (8, 64, 32, 32), dtype=jnp.float32)
    y3 = jax.block_until_ready(jax.jit(ssp)(x3))
    assert jnp.allclose(y3, _ssp_jnp(x3), atol=1e-5, rtol=1e-5)

    print("KERNEL_OK")
</pallas_src>

<mosaic_0001>
module attributes {stable_mosaic.version = 11 : i64} {
  func.func @_ssp_kernel(%arg0: i32, %arg1: memref<2x1024xf32, #tpu.memory_space<vmem>>, %arg2: memref<2x1024xf32, #tpu.memory_space<vmem>>) attributes {dimension_semantics = [#tpu.dimension_semantics<parallel>], iteration_bounds = array<i64: 1>, scalar_prefetch = 0 : i64, scratch_operands = 0 : i64, tpu.core_type = #tpu.core_type<tc>, window_params = [{transform_indices = @transform_0, window_bounds = array<i64: 2, 1024>}, {transform_indices = @transform_1, window_bounds = array<i64: 2, 1024>}]} {
    %c0 = arith.constant 0 : index
    %c0_0 = arith.constant 0 : index
    %0 = vector.load %arg1[%c0, %c0_0] : memref<2x1024xf32, #tpu.memory_space<vmem>>, vector<2x1024xf32>
    %1 = math.absf %0 : vector<2x1024xf32>
    %cst = arith.constant 0.000000e+00 : f32
    %2 = vector.broadcast %cst : f32 to vector<2x1024xf32>
    %3 = arith.subf %2, %1 : vector<2x1024xf32>
    %4 = math.exp %3 : vector<2x1024xf32>
    %5 = math.log1p %4 : vector<2x1024xf32>
    %cst_1 = arith.constant 0.000000e+00 : f32
    %6 = vector.broadcast %cst_1 : f32 to vector<2x1024xf32>
    %7 = arith.maximumf %0, %6 : vector<2x1024xf32>
    %8 = arith.addf %5, %7 : vector<2x1024xf32>
    %cst_2 = arith.constant 0.693147182 : f32
    %9 = vector.broadcast %cst_2 : f32 to vector<2x1024xf32>
    %10 = arith.subf %8, %9 : vector<2x1024xf32>
    %c0_3 = arith.constant 0 : index
    %c0_4 = arith.constant 0 : index
    %11 = vector.load %arg2[%c0_3, %c0_4] : memref<2x1024xf32, #tpu.memory_space<vmem>>, vector<2x1024xf32>
    tpu.vector_store %arg2[%c0_3, %c0_4], %10 {strides = array<i32>} : memref<2x1024xf32, #tpu.memory_space<vmem>>, vector<2x1024xf32>,
    return
  }
  func.func @transform_0(%arg0: i32) -> (i32, i32) {
    %c0_i32 = arith.constant 0 : i32
    %c0_i32_0 = arith.constant 0 : i32
    return %arg0, %c0_i32 : i32, i32
  }
  func.func @transform_1(%arg0: i32) -> (i32, i32) {
    %c0_i32 = arith.constant 0 : i32
    %c0_i32_0 = arith.constant 0 : i32
    return %arg0, %c0_i32 : i32, i32
  }
}

</mosaic_0001>

<bundles_post_ra>
// kernel: tpu_custom_call.1
= control target key start
LH: loop header
LB: loop body
LE: loop exit
PB: predicated region body
PF: predicated region fallthrough
CT: control target
= control target key end

     0   :  { %6 = vsyncpa [#allocation3], 0  ;;  %s158_s0 = inlined_call_operand.hbm [shape: f32[2,1024], index: 0, kind: input, shape index: {}]   ;;  %s159_s1 = inlined_call_operand.hbm [shape: f32[2,1024], index: 1, kind: output, shape index: {}]  }
   0x1   :  { %7 = vsyncpa [#allocation4], 0  ;;  %s13_s8 = sshll.u32 %s158_s0, 4  ;;  %s140_s9 = smov [#allocation2]   ;;  %s14_s8 = int_to_ptr.hbm [resolvable:$true] %s13_s8 }
   0x2   :  { %s15_s10 = sshll.u32 %s140_s9, 4  ;;  %s16_s10 = int_to_ptr.vmem [resolvable:$true] %s15_s10 }
   0x3   :  { %18 = dma.hbm_to_vmem [thread:$0]  %s14_s8, 256, %s16_s10, [#allocation3]  }
   0x4   :  { %136 = dma.done.wait [#allocation3], 256  }
   0x5   :  { %137 = vsyncadd [#allocation3], 4294967040  ;;  %v23_v0 = vld [vmem:[#allocation2] sm:$0xff]  ;;  %v24_v1 = vld [vmem:[#allocation2 + $0x8] sm:$0xff]  ;;  %s141_s0 = smov [#allocation5]   ;;  %s66_s14 = sshll.u32 %s159_s1, 4  ;;  %s67_s14 = int_to_ptr.hbm [resolvable:$true] %s66_s14 }
   0x6   :  { %v25_v2 = vand.u32 2147483647, %v23_v0  ;;  %v26_v3 = vand.u32 2147483647, %v24_v1  ;;  %v51_v20 = vmax.f32 %v23_v0, 0.0  ;;  %v52_v24 = vmax.f32 %v24_v1, 0.0 }
   0x7   :  { %s64_s11 = sshll.u32 %s141_s0, 4  ;;  %s65_s11 = int_to_ptr.vmem [resolvable:$true] %s64_s11 }
   0x8   :  { %v27_v4 = vsub.f32 0.0, %v25_v2  ;;  %v28_v5 = vsub.f32 0.0, %v26_v3 }
   0xa   :  { %v29_v6 = vmul.f32 1.442695, %v27_v4  ;;  %v31_v7 = vmul.f32 1.442695, %v28_v5 }
   0xc   :  { %80 = vpow2.f32 %v29_v6 }
   0xd   :  { %82 = vpow2.f32 %v31_v7 }
  0x12   :  { %v81_v8 = vpop.eup %80 }
  0x13   :  { %v83_v9 = vpop.eup %82  ;;  %v33_v10 = vadd.f32 1.0, %v81_v8  ;;  %v36_v11 = vmul.f32 -0.5, %v81_v8  ;;  %v39_v15 = vand.u32 2147483647, %v81_v8 }
  0x14   :  { %v42_v12 = vadd.f32 1.0, %v83_v9  ;;  %v45_v13 = vmul.f32 -0.5, %v83_v9  ;;  %v48_v17 = vand.u32 2147483647, %v83_v9 }
  0x15   :  { %84 = vlog2.f32 %v33_v10  ;;  %v37_v14 = vadd.f32 1.0, %v36_v11  ;;  %vm40_vm0 = vcmp.lt.f32.partialorder %v39_v15, 0.0004427343 }
  0x16   :  { %86 = vlog2.f32 %v42_v12  ;;  %v46_v16 = vadd.f32 1.0, %v45_v13  ;;  %vm49_vm1 = vcmp.lt.f32.partialorder %v48_v17, 0.0004427343 }
  0x17   :  { %v38_v18 = vmul.f32 %v81_v8, %v37_v14 }
  0x18   :  { %v47_v21 = vmul.f32 %v83_v9, %v46_v16 }
  0x1b   :  { %v85_v19 = vpop.eup %84 }
  0x1c   :  { %v87_v22 = vpop.eup %86  ;;  %v35_v23 = vmul.f32 0.6931472, %v85_v19 }
  0x1d   :  { %v44_v25 = vmul.f32 0.6931472, %v87_v22 }
  0x1e   :  { %v41_v26 = vsel %vm40_vm0, %v38_v18, %v35_v23 }
  0x1f   :  { %v53_v27 = vadd.f32 %v51_v20, %v41_v26  ;;  %v50_v28 = vsel %vm49_vm1, %v47_v21, %v44_v25 }
  0x20   :  { %v54_v29 = vadd.f32 %v52_v24, %v50_v28 }
  0x21   :  { %v76_v30 = vadd.f32 -0.6931472, %v53_v27 }
  0x22   :  { %v77_v31 = vadd.f32 -0.6931472, %v54_v29 }
  0x23   :  { %57 = vst [vmem:[#allocation5] sm:$0xff] %v76_v30 }
  0x24   :  { %58 = vst [vmem:[#allocation5 + $0x8] sm:$0xff] %v77_v31 }
  0x25   :  { %69 = dma.vmem_to_hbm [thread:$0]  %s65_s11, 256, %s67_s14, [#allocation4]  }
  0x26   :  { %138 = dma.done.wait [#allocation4], 256  }
  0x27   :  { %139 = vsyncadd [#allocation4], 4294967040 }
  0x28   :  { %74 = vsyncpa [#allocation3], 1 }
  0x29   :  { %75 = vsyncpa [#allocation4], 1 }

</bundles_post_ra>
